<compile_context>
chip_gen: v6e
topology: v6e:2x2x1
jax: 0.10.0
libtpu: 0.0.40
codegen_flags: <defaults>
</compile_context>

<pallas_src>
import functools
import math

import jax
import jax.numpy as jnp
from jax import lax
from jax.experimental import pallas as pl
from jax.experimental.pallas import tpu as pltpu


# ----------------------------------------------------------------------------
# Pallas kernel: whole attention hot path (all batches, all heads) in one step.
#   u_ref: (b, nq, h*d_k)   k_ref: (b, nk, h*d_k)
#   p_ref: (b, nk, h*d_v)   g_ref: (b, nq, h*d_v)
#   P_ref: (b, nq, h*d_v)   D_ref: (b, nk, h*d_v)
# Heads live on the lane axis (contiguous d-wide chunks), exactly as the
# projection layers emit them.
# ----------------------------------------------------------------------------
def _attn_core_kernel(u_ref, k_ref, p_ref, g_ref, P_ref, D_ref, *,
                      h, d_k, d_v, mxu_dtype):
    b = u_ref.shape[0]

    # ---- scores: per-head QK^T (batched over b), stacked to (h*b, nq, nk) ----
    att_parts = []
    for hd in range(h):  # h is small & static -> fully unrolled
        u_h = u_ref[:, :, hd * d_k:(hd + 1) * d_k].astype(mxu_dtype)   # (b,nq,d_k)
        k_h = k_ref[:, :, hd * d_k:(hd + 1) * d_k].astype(mxu_dtype)   # (b,nk,d_k)
        # att_h = u_h @ k_h^T, the transpose absorbed into dimension_numbers.
        att_parts.append(
            lax.dot_general(u_h, k_h, (((2,), (2,)), ((0,), (0,))),
                            preferred_element_type=jnp.float32))        # (b,nq,nk)
    att = jnp.concatenate(att_parts, axis=0)                            # (h*b,nq,nk)

    # ---- one exp feeds both softmaxes (shared per-tile stabilizer) ----
    m = jnp.max(att, axis=2, keepdims=True)
    m = jnp.max(m, axis=1, keepdims=True)                               # (h*b,1,1)
    e = jnp.exp(att - m)
    # P path: normalize over keys (lanes); D path: normalize over queries
    # (sublanes).  approx reciprocal -> EUP slot, ~free.
    w_p = e * pl.reciprocal(jnp.sum(e, axis=2, keepdims=True), approx=True)
    w_d = e * pl.reciprocal(jnp.sum(e, axis=1, keepdims=True), approx=True)

    # ---- value matmuls; assemble lane-dense (n, h*d_v) output slabs ----
    P_parts, D_parts = [], []
    for hd in range(h):
        wp_h = w_p[hd * b:(hd + 1) * b].astype(mxu_dtype)               # (b,nq,nk)
        wd_h = w_d[hd * b:(hd + 1) * b].astype(mxu_dtype)               # (b,nq,nk)
        p_h = p_ref[:, :, hd * d_v:(hd + 1) * d_v].astype(mxu_dtype)    # (b,nk,d_v)
        g_h = g_ref[:, :, hd * d_v:(hd + 1) * d_v].astype(mxu_dtype)    # (b,nq,d_v)
        P_parts.append(
            lax.dot_general(wp_h, p_h, (((2,), (1,)), ((0,), (0,))),
                            preferred_element_type=jnp.float32))        # (b,nq,d_v)
        # Contract over the query axis (the "att.T" of the D path) via dims.
        D_parts.append(
            lax.dot_general(wd_h, g_h, (((1,), (1,)), ((0,), (0,))),
                            preferred_element_type=jnp.float32))        # (b,nk,d_v)

    # ONE unmasked 128-lane store per output (heads concatenated on lanes).
    P_ref[...] = jnp.concatenate(P_parts, axis=-1).astype(P_ref.dtype)
    D_ref[...] = jnp.concatenate(D_parts, axis=-1).astype(D_ref.dtype)


def attention_core(u, k, p, g, *, h, d_k, d_v, mxu_dtype=jnp.float32):
    """u: (b,nq,h*d_k)  k: (b,nk,h*d_k)  p: (b,nk,h*d_v)  g: (b,nq,h*d_v)
    Returns P: (b,nq,h*d_v), D: (b,nk,h*d_v), heads concatenated on the last axis.
    1/sqrt(d_k) must already be folded into u (done in the query weights)."""
    b, nq, _ = u.shape
    nk = k.shape[1]
    kernel = functools.partial(_attn_core_kernel, h=h, d_k=d_k, d_v=d_v,
                               mxu_dtype=mxu_dtype)
    return pl.pallas_call(
        kernel,
        out_shape=(
            jax.ShapeDtypeStruct((b, nq, h * d_v), u.dtype),
            jax.ShapeDtypeStruct((b, nk, h * d_v), u.dtype),
        ),
        grid=(1,),  # single step; whole problem fits trivially in VMEM
        in_specs=[
            pl.BlockSpec((b, nq, h * d_k), lambda i: (0, 0, 0)),
            pl.BlockSpec((b, nk, h * d_k), lambda i: (0, 0, 0)),
            pl.BlockSpec((b, nk, h * d_v), lambda i: (0, 0, 0)),
            pl.BlockSpec((b, nq, h * d_v), lambda i: (0, 0, 0)),
        ],
        out_specs=(
            pl.BlockSpec((b, nq, h * d_v), lambda i: (0, 0, 0)),
            pl.BlockSpec((b, nk, h * d_v), lambda i: (0, 0, 0)),
        ),
        compiler_params=pltpu.CompilerParams(
            dimension_semantics=("arbitrary",)),
    )(u, k, p, g)


# ----------------------------------------------------------------------------
# Parameters (match init_weights: Linear weight ~ N(0, 0.001), bias = 0).
# ----------------------------------------------------------------------------
def init_params(key, d_k, d_v, h):
    """Raw parameters, 1:1 with the PyTorch module."""
    def linear(k, out_dim, in_dim):
        w = 0.001 * jax.random.normal(k, (out_dim, in_dim), dtype=jnp.float32)
        b = jnp.zeros((out_dim,), dtype=jnp.float32)
        return w, b

    ks = jax.random.split(key, 6)
    Wq, bq = linear(ks[0], h * d_k, d_k)
    Wk, bk = linear(ks[1], h * d_k, d_k)
    Wp, bp = linear(ks[2], h * d_v, d_v)
    Wg, bg = linear(ks[3], h * d_v, d_v)
    Wo1, bo1 = linear(ks[4], d_k, h * d_k)
    Wo2, bo2 = linear(ks[5], d_v, h * d_v)
    return dict(Wq=Wq, bq=bq, Wk=Wk, bk=bk, Wp=Wp, bp=bp, Wg=Wg, bg=bg,
                Wo1=Wo1, bo1=bo1, Wo2=Wo2, bo2=bo2)


def prepare_params(params, d_k):
    """One-time host-side fold of 1/sqrt(d_k) into the query projection, so
    neither the wrapper nor the kernel performs any runtime scaling."""
    scale = 1.0 / math.sqrt(d_k)
    out = dict(params)
    out["Wq"] = params["Wq"] * scale
    out["bq"] = params["bq"] * scale
    return out


# ----------------------------------------------------------------------------
# Forward: projections / output projections are XLA glue; attention core is
# the Pallas kernel.  `params` must come from prepare_params().
# h/d_k/d_v are static keyword-only Python ints.
# ----------------------------------------------------------------------------
def sdpa_forward(params, queries, keys, *, h, d_k, d_v, mxu_dtype=jnp.float32):
    # Projections stay in their natural lane-dense (b, n, h*d) layout; no head
    # transposes here (the kernel slices heads on the lane axis).
    u = queries @ params["Wq"].T + params["bq"]      # (b, nq, h*d_k), pre-scaled
    k = keys    @ params["Wk"].T + params["bk"]      # (b, nk, h*d_k)
    p = keys    @ params["Wp"].T + params["bp"]      # (b, nk, h*d_v)
    g = queries @ params["Wg"].T + params["bg"]      # (b, nq, h*d_v)

    # Pallas hot path: outputs already head-concatenated / lane-dense.
    P_cat, D_cat = attention_core(u, k, p, g, h=h, d_k=d_k, d_v=d_v,
                                  mxu_dtype=mxu_dtype)

    P = P_cat @ params["Wo1"].T + params["bo1"]      # (b, nq, d_k)
    D = D_cat @ params["Wo2"].T + params["bo2"]      # (b, nk, d_v)
    return P, D


# Pure-JAX reference (mirrors the PyTorch module; uses RAW, unscaled params).
def sdpa_reference(params, queries, keys, *, h, d_k, d_v):
    b_s, nq, _ = queries.shape
    nk = keys.shape[1]
    u = jnp.transpose((queries @ params["Wq"].T + params["bq"])
                      .reshape(b_s, nq, h, d_k), (0, 2, 1, 3))
    v = jnp.transpose((keys @ params["Wk"].T + params["bk"])
                      .reshape(b_s, nk, h, d_k), (0, 2, 3, 1))
    p = jnp.transpose((keys @ params["Wp"].T + params["bp"])
                      .reshape(b_s, nk, h, d_v), (0, 2, 1, 3))
    g = jnp.transpose((queries @ params["Wg"].T + params["bg"])
                      .reshape(b_s, nq, h, d_v), (0, 2, 1, 3))
    att = jnp.einsum("bhqd,bhdk->bhqk", u, v) / math.sqrt(d_k)
    att_p = jax.nn.softmax(att, axis=-1)
    att_d = jax.nn.softmax(jnp.swapaxes(att, -1, -2), axis=-1)
    P = jnp.einsum("bhqk,bhkd->bhqd", att_p, p)
    D = jnp.einsum("bhkq,bhqd->bhkd", att_d, g)
    P = jnp.transpose(P, (0, 2, 1, 3)).reshape(b_s, nq, h * d_v)
    D = jnp.transpose(D, (0, 2, 1, 3)).reshape(b_s, nk, h * d_v)
    return (P @ params["Wo1"].T + params["bo1"],
            D @ params["Wo2"].T + params["bo2"])


if __name__ == "__main__":
    # The module's forward requires queries/keys last dim == d_k == d_v.
    d_k = d_v = d_model = 32
    h = 4
    b_s, nq, nk = 2, 8, 8

    key = jax.random.PRNGKey(0)
    k_param, k_q, k_k = jax.random.split(key, 3)
    raw_params = init_params(k_param, d_k, d_v, h)
    params = prepare_params(raw_params, d_k)          # host-side, one-time

    queries = jax.random.normal(k_q, (b_s, nq, d_model), dtype=jnp.float32)
    keys = jax.random.normal(k_k, (b_s, nk, d_model), dtype=jnp.float32)

    # Keep f32 MXU/EUP here for exact parity with the f32 reference at these
    # tiny shapes; pass mxu_dtype=jnp.bfloat16 on v6e/v7x at realistic sizes.
    fwd = jax.jit(functools.partial(sdpa_forward, h=h, d_k=d_k, d_v=d_v))
    P, D = fwd(params, queries, keys)
    jax.block_until_ready((P, D))

    P_ref, D_ref = sdpa_reference(raw_params, queries, keys, h=h, d_k=d_k, d_v=d_v)
    assert P.shape == (b_s, nq, d_k) and D.shape == (b_s, nk, d_v)
    assert jnp.allclose(P, P_ref, atol=1e-5, rtol=1e-3), \
        float(jnp.max(jnp.abs(P - P_ref)))
    assert jnp.allclose(D, D_ref, atol=1e-5, rtol=1e-3), \
        float(jnp.max(jnp.abs(D - D_ref)))

    print("KERNEL_OK")
</pallas_src>

<mosaic_0001>
module attributes {stable_mosaic.version = 11 : i64} {
  func.func @_attn_core_kernel(%arg0: i32, %arg1: memref<2x8x128xf32, #tpu.memory_space<vmem>>, %arg2: memref<2x8x128xf32, #tpu.memory_space<vmem>>, %arg3: memref<2x8x128xf32, #tpu.memory_space<vmem>>, %arg4: memref<2x8x128xf32, #tpu.memory_space<vmem>>, %arg5: memref<2x8x128xf32, #tpu.memory_space<vmem>>, %arg6: memref<2x8x128xf32, #tpu.memory_space<vmem>>) attributes {dimension_semantics = [#tpu.dimension_semantics<arbitrary>], iteration_bounds = array<i64: 1>, scalar_prefetch = 0 : i64, scratch_operands = 0 : i64, tpu.core_type = #tpu.core_type<tc>, window_params = [{pipeline_mode = #tpu.pipeline_mode<synchronous>, transform_indices = @transform_0, window_bounds = array<i64: 2, 8, 128>}, {pipeline_mode = #tpu.pipeline_mode<synchronous>, transform_indices = @transform_1, window_bounds = array<i64: 2, 8, 128>}, {pipeline_mode = #tpu.pipeline_mode<synchronous>, transform_indices = @transform_2, window_bounds = array<i64: 2, 8, 128>}, {pipeline_mode = #tpu.pipeline_mode<synchronous>, transform_indices = @transform_3, window_bounds = array<i64: 2, 8, 128>}, {pipeline_mode = #tpu.pipeline_mode<synchronous>, transform_indices = @transform_4, window_bounds = array<i64: 2, 8, 128>}, {pipeline_mode = #tpu.pipeline_mode<synchronous>, transform_indices = @transform_5, window_bounds = array<i64: 2, 8, 128>}]} {
    %c0 = arith.constant 0 : index
    %c0_0 = arith.constant 0 : index
    %c0_1 = arith.constant 0 : index
    %0 = vector.load %arg1[%c0, %c0_0, %c0_1] : memref<2x8x128xf32, #tpu.memory_space<vmem>>, vector<2x8x32xf32>
    %c0_2 = arith.constant 0 : index
    %c0_3 = arith.constant 0 : index
    %c0_4 = arith.constant 0 : index
    %1 = vector.load %arg2[%c0_2, %c0_3, %c0_4] : memref<2x8x128xf32, #tpu.memory_space<vmem>>, vector<2x8x32xf32>
    %cst = arith.constant dense<0.000000e+00> : vector<2x8x8xf32>
    %2 = tpu.matmul %0, %1, %cst {dimension_numbers = #tpu.dot_dimension_numbers<[2], [2], [1], [1], [0, 0, 0, 1, 1, 1], [0], [0]>} : vector<2x8x32xf32>, vector<2x8x32xf32>, vector<2x8x8xf32> -> vector<2x8x8xf32>
    %c0_5 = arith.constant 0 : index
    %c0_6 = arith.constant 0 : index
    %c32 = arith.constant 32 : index
    %3 = vector.load %arg1[%c0_5, %c0_6, %c32] : memref<2x8x128xf32, #tpu.memory_space<vmem>>, vector<2x8x32xf32>
    %c0_7 = arith.constant 0 : index
    %c0_8 = arith.constant 0 : index
    %c32_9 = arith.constant 32 : index
    %4 = vector.load %arg2[%c0_7, %c0_8, %c32_9] : memref<2x8x128xf32, #tpu.memory_space<vmem>>, vector<2x8x32xf32>
    %cst_10 = arith.constant dense<0.000000e+00> : vector<2x8x8xf32>
    %5 = tpu.matmul %3, %4, %cst_10 {dimension_numbers = #tpu.dot_dimension_numbers<[2], [2], [1], [1], [0, 0, 0, 1, 1, 1], [0], [0]>} : vector<2x8x32xf32>, vector<2x8x32xf32>, vector<2x8x8xf32> -> vector<2x8x8xf32>
    %c0_11 = arith.constant 0 : index
    %c0_12 = arith.constant 0 : index
    %c64 = arith.constant 64 : index
    %6 = vector.load %arg1[%c0_11, %c0_12, %c64] : memref<2x8x128xf32, #tpu.memory_space<vmem>>, vector<2x8x32xf32>
    %c0_13 = arith.constant 0 : index
    %c0_14 = arith.constant 0 : index
    %c64_15 = arith.constant 64 : index
    %7 = vector.load %arg2[%c0_13, %c0_14, %c64_15] : memref<2x8x128xf32, #tpu.memory_space<vmem>>, vector<2x8x32xf32>
    %cst_16 = arith.constant dense<0.000000e+00> : vector<2x8x8xf32>
    %8 = tpu.matmul %6, %7, %cst_16 {dimension_numbers = #tpu.dot_dimension_numbers<[2], [2], [1], [1], [0, 0, 0, 1, 1, 1], [0], [0]>} : vector<2x8x32xf32>, vector<2x8x32xf32>, vector<2x8x8xf32> -> vector<2x8x8xf32>
    %c0_17 = arith.constant 0 : index
    %c0_18 = arith.constant 0 : index
    %c96 = arith.constant 96 : index
    %9 = vector.load %arg1[%c0_17, %c0_18, %c96] : memref<2x8x128xf32, #tpu.memory_space<vmem>>, vector<2x8x32xf32>
    %c0_19 = arith.constant 0 : index
    %c0_20 = arith.constant 0 : index
    %c96_21 = arith.constant 96 : index
    %10 = vector.load %arg2[%c0_19, %c0_20, %c96_21] : memref<2x8x128xf32, #tpu.memory_space<vmem>>, vector<2x8x32xf32>
    %cst_22 = arith.constant dense<0.000000e+00> : vector<2x8x8xf32>
    %11 = tpu.matmul %9, %10, %cst_22 {dimension_numbers = #tpu.dot_dimension_numbers<[2], [2], [1], [1], [0, 0, 0, 1, 1, 1], [0], [0]>} : vector<2x8x32xf32>, vector<2x8x32xf32>, vector<2x8x8xf32> -> vector<2x8x8xf32>
    %12 = tpu.concatenate %2, %5, %8, %11 in 0 : vector<2x8x8xf32>, vector<2x8x8xf32>, vector<2x8x8xf32>, vector<2x8x8xf32> -> vector<8x8x8xf32>
    %cst_23 = arith.constant dense<0xFF800000> : vector<8x8xf32>
    %13 = vector.multi_reduction <maximumf>, %12, %cst_23 [2] : vector<8x8x8xf32> to vector<8x8xf32>
    %14 = vector.shape_cast %13 : vector<8x8xf32> to vector<8x8x1xf32>
    %cst_24 = arith.constant dense<0xFF800000> : vector<8x1xf32>
    %15 = vector.multi_reduction <maximumf>, %14, %cst_24 [1] : vector<8x8x1xf32> to vector<8x1xf32>
    %16 = vector.shape_cast %15 : vector<8x1xf32> to vector<8x1x1xf32>
    %17 = vector.broadcast %16 : vector<8x1x1xf32> to vector<8x8x8xf32>
    %18 = arith.subf %12, %17 : vector<8x8x8xf32>
    %19 = math.exp %18 : vector<8x8x8xf32>
    %cst_25 = arith.constant dense<0.000000e+00> : vector<8x8xf32>
    %20 = vector.multi_reduction <add>, %19, %cst_25 [2] : vector<8x8x8xf32> to vector<8x8xf32>
    %21 = vector.shape_cast %20 : vector<8x8xf32> to vector<8x8x1xf32>
    %22 = tpu.reciprocal %21 {approx = true} : vector<8x8x1xf32> -> vector<8x8x1xf32>
    %23 = vector.broadcast %22 : vector<8x8x1xf32> to vector<8x8x8xf32>
    %24 = arith.mulf %19, %23 : vector<8x8x8xf32>
    %cst_26 = arith.constant dense<0.000000e+00> : vector<8x8xf32>
    %25 = vector.multi_reduction <add>, %19, %cst_26 [1] : vector<8x8x8xf32> to vector<8x8xf32>
    %26 = vector.shape_cast %25 : vector<8x8xf32> to vector<8x1x8xf32>
    %27 = tpu.reciprocal %26 {approx = true} : vector<8x1x8xf32> -> vector<8x1x8xf32>
    %28 = vector.broadcast %27 : vector<8x1x8xf32> to vector<8x8x8xf32>
    %29 = arith.mulf %19, %28 : vector<8x8x8xf32>
    %30 = vector.extract_strided_slice %24 {offsets = [0, 0, 0], sizes = [2, 8, 8], strides = [1, 1, 1]} : vector<8x8x8xf32> to vector<2x8x8xf32>
    %31 = vector.extract_strided_slice %29 {offsets = [0, 0, 0], sizes = [2, 8, 8], strides = [1, 1, 1]} : vector<8x8x8xf32> to vector<2x8x8xf32>
    %c0_27 = arith.constant 0 : index
    %c0_28 = arith.constant 0 : index
    %c0_29 = arith.constant 0 : index
    %32 = vector.load %arg3[%c0_27, %c0_28, %c0_29] : memref<2x8x128xf32, #tpu.memory_space<vmem>>, vector<2x8x32xf32>
    %c0_30 = arith.constant 0 : index
    %c0_31 = arith.constant 0 : index
    %c0_32 = arith.constant 0 : index
    %33 = vector.load %arg4[%c0_30, %c0_31, %c0_32] : memref<2x8x128xf32, #tpu.memory_space<vmem>>, vector<2x8x32xf32>
    %cst_33 = arith.constant dense<0.000000e+00> : vector<2x8x32xf32>
    %34 = tpu.matmul %30, %32, %cst_33 {dimension_numbers = #tpu.dot_dimension_numbers<[2], [1], [1], [2], [0, 0, 0, 1, 1, 2], [0], [0]>} : vector<2x8x8xf32>, vector<2x8x32xf32>, vector<2x8x32xf32> -> vector<2x8x32xf32>
    %cst_34 = arith.constant dense<0.000000e+00> : vector<2x8x32xf32>
    %35 = tpu.matmul %31, %33, %cst_34 {dimension_numbers = #tpu.dot_dimension_numbers<[1], [1], [2], [2], [0, 0, 0, 2, 1, 2], [0], [0]>} : vector<2x8x8xf32>, vector<2x8x32xf32>, vector<2x8x32xf32> -> vector<2x8x32xf32>
    %36 = vector.extract_strided_slice %24 {offsets = [2, 0, 0], sizes = [2, 8, 8], strides = [1, 1, 1]} : vector<8x8x8xf32> to vector<2x8x8xf32>
    %37 = vector.extract_strided_slice %29 {offsets = [2, 0, 0], sizes = [2, 8, 8], strides = [1, 1, 1]} : vector<8x8x8xf32> to vector<2x8x8xf32>
    %c0_35 = arith.constant 0 : index
    %c0_36 = arith.constant 0 : index
    %c32_37 = arith.constant 32 : index
    %38 = vector.load %arg3[%c0_35, %c0_36, %c32_37] : memref<2x8x128xf32, #tpu.memory_space<vmem>>, vector<2x8x32xf32>
    %c0_38 = arith.constant 0 : index
    %c0_39 = arith.constant 0 : index
    %c32_40 = arith.constant 32 : index
    %39 = vector.load %arg4[%c0_38, %c0_39, %c32_40] : memref<2x8x128xf32, #tpu.memory_space<vmem>>, vector<2x8x32xf32>
    %cst_41 = arith.constant dense<0.000000e+00> : vector<2x8x32xf32>
    %40 = tpu.matmul %36, %38, %cst_41 {dimension_numbers = #tpu.dot_dimension_numbers<[2], [1], [1], [2], [0, 0, 0, 1, 1, 2], [0], [0]>} : vector<2x8x8xf32>, vector<2x8x32xf32>, vector<2x8x32xf32> -> vector<2x8x32xf32>
    %cst_42 = arith.constant dense<0.000000e+00> : vector<2x8x32xf32>
    %41 = tpu.matmul %37, %39, %cst_42 {dimension_numbers = #tpu.dot_dimension_numbers<[1], [1], [2], [2], [0, 0, 0, 2, 1, 2], [0], [0]>} : vector<2x8x8xf32>, vector<2x8x32xf32>, vector<2x8x32xf32> -> vector<2x8x32xf32>
    %42 = vector.extract_strided_slice %24 {offsets = [4, 0, 0], sizes = [2, 8, 8], strides = [1, 1, 1]} : vector<8x8x8xf32> to vector<2x8x8xf32>
    %43 = vector.extract_strided_slice %29 {offsets = [4, 0, 0], sizes = [2, 8, 8], strides = [1, 1, 1]} : vector<8x8x8xf32> to vector<2x8x8xf32>
    %c0_43 = arith.constant 0 : index
    %c0_44 = arith.constant 0 : index
    %c64_45 = arith.constant 64 : index
    %44 = vector.load %arg3[%c0_43, %c0_44, %c64_45] : memref<2x8x128xf32, #tpu.memory_space<vmem>>, vector<2x8x32xf32>
    %c0_46 = arith.constant 0 : index
    %c0_47 = arith.constant 0 : index
    %c64_48 = arith.constant 64 : index
    %45 = vector.load %arg4[%c0_46, %c0_47, %c64_48] : memref<2x8x128xf32, #tpu.memory_space<vmem>>, vector<2x8x32xf32>
    %cst_49 = arith.constant dense<0.000000e+00> : vector<2x8x32xf32>
    %46 = tpu.matmul %42, %44, %cst_49 {dimension_numbers = #tpu.dot_dimension_numbers<[2], [1], [1], [2], [0, 0, 0, 1, 1, 2], [0], [0]>} : vector<2x8x8xf32>, vector<2x8x32xf32>, vector<2x8x32xf32> -> vector<2x8x32xf32>
    %cst_50 = arith.constant dense<0.000000e+00> : vector<2x8x32xf32>
    %47 = tpu.matmul %43, %45, %cst_50 {dimension_numbers = #tpu.dot_dimension_numbers<[1], [1], [2], [2], [0, 0, 0, 2, 1, 2], [0], [0]>} : vector<2x8x8xf32>, vector<2x8x32xf32>, vector<2x8x32xf32> -> vector<2x8x32xf32>
    %48 = vector.extract_strided_slice %24 {offsets = [6, 0, 0], sizes = [2, 8, 8], strides = [1, 1, 1]} : vector<8x8x8xf32> to vector<2x8x8xf32>
    %49 = vector.extract_strided_slice %29 {offsets = [6, 0, 0], sizes = [2, 8, 8], strides = [1, 1, 1]} : vector<8x8x8xf32> to vector<2x8x8xf32>
    %c0_51 = arith.constant 0 : index
    %c0_52 = arith.constant 0 : index
    %c96_53 = arith.constant 96 : index
    %50 = vector.load %arg3[%c0_51, %c0_52, %c96_53] : memref<2x8x128xf32, #tpu.memory_space<vmem>>, vector<2x8x32xf32>
    %c0_54 = arith.constant 0 : index
    %c0_55 = arith.constant 0 : index
    %c96_56 = arith.constant 96 : index
    %51 = vector.load %arg4[%c0_54, %c0_55, %c96_56] : memref<2x8x128xf32, #tpu.memory_space<vmem>>, vector<2x8x32xf32>
    %cst_57 = arith.constant dense<0.000000e+00> : vector<2x8x32xf32>
    %52 = tpu.matmul %48, %50, %cst_57 {dimension_numbers = #tpu.dot_dimension_numbers<[2], [1], [1], [2], [0, 0, 0, 1, 1, 2], [0], [0]>} : vector<2x8x8xf32>, vector<2x8x32xf32>, vector<2x8x32xf32> -> vector<2x8x32xf32>
    %cst_58 = arith.constant dense<0.000000e+00> : vector<2x8x32xf32>
    %53 = tpu.matmul %49, %51, %cst_58 {dimension_numbers = #tpu.dot_dimension_numbers<[1], [1], [2], [2], [0, 0, 0, 2, 1, 2], [0], [0]>} : vector<2x8x8xf32>, vector<2x8x32xf32>, vector<2x8x32xf32> -> vector<2x8x32xf32>
    %54 = tpu.concatenate %34, %40, %46, %52 in 2 : vector<2x8x32xf32>, vector<2x8x32xf32>, vector<2x8x32xf32>, vector<2x8x32xf32> -> vector<2x8x128xf32>
    %c0_59 = arith.constant 0 : index
    %c0_60 = arith.constant 0 : index
    %c0_61 = arith.constant 0 : index
    %55 = vector.load %arg5[%c0_59, %c0_60, %c0_61] : memref<2x8x128xf32, #tpu.memory_space<vmem>>, vector<2x8x128xf32>
    tpu.vector_store %arg5[%c0_59, %c0_60, %c0_61], %54 {strides = array<i32>} : memref<2x8x128xf32, #tpu.memory_space<vmem>>, vector<2x8x128xf32>,
    %56 = tpu.concatenate %35, %41, %47, %53 in 2 : vector<2x8x32xf32>, vector<2x8x32xf32>, vector<2x8x32xf32>, vector<2x8x32xf32> -> vector<2x8x128xf32>
    %c0_62 = arith.constant 0 : index
    %c0_63 = arith.constant 0 : index
    %c0_64 = arith.constant 0 : index
    %57 = vector.load %arg6[%c0_62, %c0_63, %c0_64] : memref<2x8x128xf32, #tpu.memory_space<vmem>>, vector<2x8x128xf32>
    tpu.vector_store %arg6[%c0_62, %c0_63, %c0_64], %56 {strides = array<i32>} : memref<2x8x128xf32, #tpu.memory_space<vmem>>, vector<2x8x128xf32>,
    return
  }
  func.func @transform_0(%arg0: i32) -> (i32, i32, i32) {
    %c0_i32 = arith.constant 0 : i32
    %c0_i32_0 = arith.constant 0 : i32
    %c0_i32_1 = arith.constant 0 : i32
    %c0_i32_2 = arith.constant 0 : i32
    return %c0_i32, %c0_i32_0, %c0_i32_1 : i32, i32, i32
  }
  func.func @transform_1(%arg0: i32) -> (i32, i32, i32) {
    %c0_i32 = arith.constant 0 : i32
    %c0_i32_0 = arith.constant 0 : i32
    %c0_i32_1 = arith.constant 0 : i32
    %c0_i32_2 = arith.constant 0 : i32
    return %c0_i32, %c0_i32_0, %c0_i32_1 : i32, i32, i32
  }
  func.func @transform_2(%arg0: i32) -> (i32, i32, i32) {
    %c0_i32 = arith.constant 0 : i32
    %c0_i32_0 = arith.constant 0 : i32
    %c0_i32_1 = arith.constant 0 : i32
    %c0_i32_2 = arith.constant 0 : i32
    return %c0_i32, %c0_i32_0, %c0_i32_1 : i32, i32, i32
  }
  func.func @transform_3(%arg0: i32) -> (i32, i32, i32) {
    %c0_i32 = arith.constant 0 : i32
    %c0_i32_0 = arith.constant 0 : i32
    %c0_i32_1 = arith.constant 0 : i32
    %c0_i32_2 = arith.constant 0 : i32
    return %c0_i32, %c0_i32_0, %c0_i32_1 : i32, i32, i32
  }
  func.func @transform_4(%arg0: i32) -> (i32, i32, i32) {
    %c0_i32 = arith.constant 0 : i32
    %c0_i32_0 = arith.constant 0 : i32
    %c0_i32_1 = arith.constant 0 : i32
    %c0_i32_2 = arith.constant 0 : i32
    return %c0_i32, %c0_i32_0, %c0_i32_1 : i32, i32, i32
  }
  func.func @transform_5(%arg0: i32) -> (i32, i32, i32) {
    %c0_i32 = arith.constant 0 : i32
    %c0_i32_0 = arith.constant 0 : i32
    %c0_i32_1 = arith.constant 0 : i32
    %c0_i32_2 = arith.constant 0 : i32
    return %c0_i32, %c0_i32_0, %c0_i32_1 : i32, i32, i32
  }
}

</mosaic_0001>

<bundles_post_ra>
// kernel: sdpa_forward.1
= control target key start
LH: loop header
LB: loop body
LE: loop exit
PB: predicated region body
PF: predicated region fallthrough
CT: control target
= control target key end

     0   :  { %vm23_vm0 = vcmask 261120   ;;  %v2640_v0 = vmov 0.0   ;;  %s2641_s24 = smov 96   ;;  %vm2642_vm1 = vmmov 0   ;;  %vm644_vm2 = vcmask 64512   ;;  %s3007_s1 = inlined_call_operand.vmem [shape: f32[2,8,128], index: 1, kind: input, shape index: {}]   ;;  %s3008_s0 = inlined_call_operand.vmem [shape: f32[2,8,128], index: 0, kind: input, shape index: {}]   ;;  %s3009_s2 = inlined_call_operand.vmem [shape: f32[2,8,128], index: 2, kind: input, shape index: {}]   ;;  %s3010_s3 = inlined_call_operand.vmem [shape: f32[2,8,128], index: 3, kind: input, shape index: {}]   ;;  %s3011_s4 = inlined_call_operand.vmem [shape: f32[2,8,128], index: 4, kind: output, shape index: {0}]   ;;  %s3012_s5 = inlined_call_operand.vmem [shape: f32[2,8,128], index: 5, kind: output, shape index: {1}]  }
   0x1   :  { %2467 = vmatprep.subr.mxu0 %v2640_v0  ;;  %2472 = vmatprep.subr.mxu1 %v2640_v0  ;;  %v22_v1 = vld [vmem:[%s3007_s1 + $0x8] sm:$0xff]  ;;  %v21_v2 = vld [vmem:[%s3007_s1] sm:$0xff]  ;;  %s2644_s1 = smov 32   ;;  %vm2339_vm3 = vcmask 523264   ;;  %vm2342_vm4 = vcmask 785408  }
   0x2   :  { %v19_v3 = vld [vmem:[%s3008_s0] sm:$0xff]  ;;  %2473 = vmatpush3.xpose.msk.msra.mxu1 %vm23_vm0, %v22_v1  ;;  %178 = vrot.lane.b32.xlu0 %v21_v2, %s2641_s24  ;;  %v20_v4 = vld [vmem:[%s3008_s0 + $0x8] sm:$0xff]  ;;  %s2643_s0 = smov 64  }
   0x3   :  { %2468 = vmatpush3.xpose.msk.msra.mxu0 %vm23_vm0, %v21_v2  ;;  %176 = vrot.lane.b32.xlu1 %v19_v3, %s2641_s24  ;;  %v846_v5 = vld [vmem:[%s3009_s2 + $0x8] sm:$0xff]  ;;  %v845_v6 = vld [vmem:[%s3009_s2] sm:$0xff] }
   0x4   :  { %2469 = vmatprep.mubr.msk.f32.mxu0 %vm2642_vm1, %v2640_v0  ;;  %2474 = vmatprep.mubr.msk.f32.mxu1 %vm2642_vm1, %v2640_v0  ;;  %v2726_v7 = vld [vmem:[%s3010_s3] sm:$0xff]  ;;  %v2734_v8 = vld [vmem:[%s3010_s3 + $0x8] sm:$0xff] }
   0x5   :  { %2475 = vmatmul.mubr.msk.f32.vlgmr.msra.gmra.mxu1 %vm23_vm0, %v20_v4  ;;  %2477 = vmatprep.subr.mxu0 %v2640_v0 }
   0x6   :  { %2470 = vmatmul.mubr.msk.f32.vlgmr.msra.gmra.mxu0 %vm23_vm0, %v19_v3  ;;  %256 = vrot.lane.b32.xlu0 %v22_v1, %s2641_s24 }
   0x7   :  { %254 = vrot.lane.b32.xlu1 %v20_v4, %s2641_s24  ;;  %2479 = vmatprep.mubr.msk.f32.mxu0 %vm2642_vm1, %v2640_v0 }
   0x8   :  { %2482 = vmatprep.subr.mxu1 %v2640_v0  ;;  %2484 = vmatprep.mubr.msk.f32.mxu1 %vm2642_vm1, %v2640_v0 }
   0xa   :  { %334 = vrot.lane.b32.xlu0 %v21_v2, %s2643_s0 }
   0xb   :  { %412 = vrot.lane.b32.xlu1 %v22_v1, %s2643_s0 }
   0xe   :  { %332 = vrot.lane.b32.xlu0 %v19_v3, %s2643_s0 }
   0xf   :  { %410 = vrot.lane.b32.xlu1 %v20_v4, %s2643_s0 }
  0x12   :  { %490 = vrot.lane.b32.xlu0 %v21_v2, %s2644_s1 }
  0x13   :  { %568 = vrot.lane.b32.xlu1 %v22_v1, %s2644_s1 }
  0x16   :  { %488 = vrot.lane.b32.xlu0 %v19_v3, %s2644_s1 }
  0x17   :  { %566 = vrot.lane.b32.xlu1 %v20_v4, %s2644_s1 }
  0x1a   :  { %1283 = vrot.lane.b32.xlu0 %v846_v5, %s2641_s24 }
  0x1b   :  { %1206 = vrot.lane.b32.xlu1 %v845_v6, %s2641_s24 }
  0x1e   :  { %1577 = vrot.lane.b32.xlu0 %v845_v6, %s2643_s0 }
  0x1f   :  { %1392 = vrot.lane.b32.xlu1 %v2726_v7, %s2641_s24 }
  0x22   :  { %1761 = vrot.lane.b32.xlu0 %v2726_v7, %s2643_s0 }
  0x23   :  { %1501 = vrot.lane.b32.xlu1 %v2734_v8, %s2641_s24 }
  0x26   :  { %1945 = vrot.lane.b32.xlu0 %v845_v6, %s2644_s1 }
  0x27   :  { %1653 = vrot.lane.b32.xlu1 %v846_v5, %s2643_s0 }
  0x2a   :  { %2129 = vrot.lane.b32.xlu0 %v2726_v7, %s2644_s1 }
  0x2b   :  { %1869 = vrot.lane.b32.xlu1 %v2734_v8, %s2643_s0 }
  0x2f   :  { %2021 = vrot.lane.b32.xlu1 %v846_v5, %s2644_s1 }
  0x74   :  { %v179_v9 = vpop.permute.xlu0 %178 }
  0x75   :  { %v177_v10 = vpop.permute.xlu1 %176  ;;  %2478 = vmatpush3.xpose.msk.msra.mxu0 %vm23_vm0, %v179_v9 }
  0x76   :  { %2487 = vmatprep.subr.mxu0 %v2640_v0 }
  0x78   :  { %v257_v11 = vpop.permute.xlu0 %256  ;;  %2480 = vmatmul.mubr.msk.f32.vlgmr.msra.gmra.mxu0 %vm23_vm0, %v177_v10 }
  0x79   :  { %v255_v12 = vpop.permute.xlu1 %254  ;;  %2483 = vmatpush3.xpose.msk.msra.mxu1 %vm23_vm0, %v257_v11  ;;  %2489 = vmatprep.mubr.msk.f32.mxu0 %vm2642_vm1, %v2640_v0 }
  0x7a   :  { %2492 = vmatprep.subr.mxu1 %v2640_v0 }
  0x7c   :  { %v335_v13 = vpop.permute.xlu0 %334  ;;  %2485 = vmatmul.mubr.msk.f32.vlgmr.msra.gmra.mxu1 %vm23_vm0, %v255_v12 }
  0x7d   :  { %v413_v14 = vpop.permute.xlu1 %412  ;;  %2488 = vmatpush3.xpose.msk.msra.mxu0 %vm23_vm0, %v335_v13  ;;  %2494 = vmatprep.mubr.msk.f32.mxu1 %vm2642_vm1, %v2640_v0 }
  0x7e   :  { %2493 = vmatpush3.xpose.msk.msra.mxu1 %vm23_vm0, %v413_v14  ;;  %2497 = vmatprep.subr.mxu0 %v2640_v0 }
  0x7f   :  { %2502 = vmatprep.subr.mxu1 %v2640_v0 }
  0x80   :  { %v333_v15 = vpop.permute.xlu0 %332 }
  0x81   :  { %v411_v16 = vpop.permute.xlu1 %410  ;;  %2490 = vmatmul.mubr.msk.f32.vlgmr.msra.gmra.mxu0 %vm23_vm0, %v333_v15 }
  0x82   :  { %2495 = vmatmul.mubr.msk.f32.vlgmr.msra.gmra.mxu1 %vm23_vm0, %v411_v16  ;;  %2499 = vmatprep.mubr.msk.f32.mxu0 %vm2642_vm1, %v2640_v0 }
  0x83   :  { %2504 = vmatprep.mubr.msk.f32.mxu1 %vm2642_vm1, %v2640_v0 }
  0x84   :  { %v491_v17 = vpop.permute.xlu0 %490 }
  0x85   :  { %v569_v18 = vpop.permute.xlu1 %568  ;;  %2498 = vmatpush3.xpose.msk.msra.mxu0 %vm23_vm0, %v491_v17 }
  0x86   :  { %2503 = vmatpush3.xpose.msk.msra.mxu1 %vm23_vm0, %v569_v18  ;;  %2507 = vmatprep.subr.mxu0 %v2640_v0 }
  0x87   :  { %2512 = vmatprep.subr.mxu1 %v2640_v0 }
  0x88   :  { %v489_v19 = vpop.permute.xlu0 %488 }
  0x89   :  { %v567_v20 = vpop.permute.xlu1 %566  ;;  %2500 = vmatmul.mubr.msk.f32.vlgmr.msra.gmra.mxu0 %vm23_vm0, %v489_v19 }
  0x8a   :  { %2505 = vmatmul.mubr.msk.f32.vlgmr.msra.gmra.mxu1 %vm23_vm0, %v567_v20  ;;  %2508 = vmatpush3.msra.mxu0 %v845_v6 }
  0x8b   :  { %2509 = vmatprep.mubr.msk.f32.mxu0 %vm2642_vm1, %v2640_v0  ;;  %2513 = vmatpush3.msra.mxu1 %v846_v5 }
  0x8c   :  { %2514 = vmatprep.mubr.msk.f32.mxu1 %vm2642_vm1, %v2640_v0  ;;  %2517 = vmatprep.subr.mxu0 %v2640_v0  ;;  %v2785_v29 = vpop.permute.xlu0 %1283 }
  0x8d   :  { %2522 = vmatprep.subr.mxu1 %v2640_v0  ;;  %v2781_v27 = vpop.permute.xlu1 %1206 }
  0x90   :  { %v2793_v34 = vpop.permute.xlu0 %1577 }
  0x91   :  { %v2783_v28 = vpop.permute.xlu1 %1392 }
  0x94   :  { %v2801_v39 = vpop.permute.xlu0 %1761 }
  0x95   :  { %v2791_v33 = vpop.permute.xlu1 %1501 }
  0x98   :  { %v2813_v47 = vpop.permute.xlu0 %1945 }
  0x99   :  { %v2799_v38 = vpop.permute.xlu1 %1653 }
  0x9c   :  { %v2825_v55 = vpop.permute.xlu0 %2129 }
  0x9d   :  { %v2811_v46 = vpop.permute.xlu1 %1869 }
  0xa1   :  { %v2823_v53 = vpop.permute.xlu1 %2021 }
  0xc5   :  { %v172_v21 = vpop.f32.mrf.mxu1 }
  0xc6   :  { %v96_v22 = vpop.f32.mrf.mxu0  ;;  %v648_v23 = vsel %vm644_vm2, %v172_v21, -inf }
  0xc7   :  { %649 = vmax.xlane.f32.xlu1 %v648_v23  ;;  %v645_v24 = vsel %vm644_vm2, %v96_v22, -inf  ;;  %v2476_v25 = vpop.f32.mrf.mxu1 }
  0xc8   :  { %646 = vmax.xlane.f32.xlu0 %v645_v24  ;;  %v2471_v26 = vpop.f32.mrf.mxu0 }
 0x138   :  { %v2787_v30 = vpop.f32.mrf.mxu0 }
 0x139   :  { %v651_v31 = vsel %vm644_vm2, %v2787_v30, -inf }
 0x13a   :  { %652 = vmax.xlane.f32.xlu0 %v651_v31  ;;  %v2481_v32 = vpop.f32.mrf.mxu0 }
 0x13c   :  { %v2795_v35 = vpop.f32.mrf.mxu1 }
 0x13d   :  { %v654_v36 = vsel %vm644_vm2, %v2795_v35, -inf }
 0x13e   :  { %655 = vmax.xlane.f32.xlu0 %v654_v36  ;;  %v2486_v37 = vpop.f32.mrf.mxu1 }
 0x141   :  { %v2803_v40 = vpop.f32.mrf.mxu0 }
 0x142   :  { %v2805_v41 = vpop.f32.mrf.mxu1  ;;  %v657_v42 = vsel %vm644_vm2, %v2803_v40, -inf }
 0x143   :  { %v660_v43 = vsel %vm644_vm2, %v2805_v41, -inf  ;;  %658 = vmax.xlane.f32.xlu1 %v657_v42  ;;  %v2491_v44 = vpop.f32.mrf.mxu0 }
 0x144   :  { %661 = vmax.xlane.f32.xlu0 %v660_v43  ;;  %v2496_v45 = vpop.f32.mrf.mxu1 }
 0x149   :  { %v2815_v48 = vpop.f32.mrf.mxu0 }
 0x14a   :  { %v2817_v49 = vpop.f32.mrf.mxu1  ;;  %v663_v50 = vsel %vm644_vm2, %v2815_v48, -inf }
 0x14b   :  { %v666_v51 = vsel %vm644_vm2, %v2817_v49, -inf  ;;  %664 = vmax.xlane.f32.xlu1 %v663_v50  ;;  %v2501_v52 = vpop.f32.mrf.mxu0 }
 0x14c   :  { %667 = vmax.xlane.f32.xlu0 %v666_v51  ;;  %v2506_v54 = vpop.f32.mrf.mxu1 }
 0x150   :  { %v650_v56 = vpop.xlane.xlu1 %649 }
 0x151   :  { %v675_v57 = vrot.slane %v650_v56, 4  ;;  %v647_v58 = vpop.xlane.xlu0 %646 }
 0x152   :  { %v669_v59 = vrot.slane %v647_v58, 4 }
 0x153   :  { %v676_v60 = vmax.f32 %v650_v56, %v675_v57 }
 0x154   :  { %v670_v61 = vmax.f32 %v647_v58, %v669_v59 }
 0x155   :  { %v677_v62 = vrot.slane %v676_v60, 2 }
 0x156   :  { %v671_v63 = vrot.slane %v670_v61, 2 }
 0x157   :  { %v678_v1 = vmax.f32 %v676_v60, %v677_v62 }
 0x158   :  { %v672_v2 = vmax.f32 %v670_v61, %v671_v63 }
 0x159   :  { %v679_v3 = vrot.slane %v678_v1, 1 }
 0x15a   :  { %v673_v4 = vrot.slane %v672_v2, 1 }
 0x15b   :  { %v680_v5 = vmax.f32 %v678_v1, %v679_v3 }
 0x15c   :  { %v674_v6 = vmax.f32 %v672_v2, %v673_v4 }
 0x15d   :  { %v718_v9 = vsub.f32 %v172_v21, %v680_v5 }
 0x15e   :  { %v717_v10 = vsub.f32 %v96_v22, %v674_v6 }
 0x15f   :  { %v727_v11 = vmul.f32 1.442695, %v718_v9 }
 0x160   :  { %v725_v12 = vmul.f32 1.442695, %v717_v10 }
 0x161   :  { %2592 = vpow2.f32 %v727_v11 }
 0x162   :  { %2594 = vpow2.f32 %v725_v12 }
 0x16e   :  { %v2827_v13 = vpop.eup %2592 }
 0x16f   :  { %v2829_v14 = vpop.eup %2594  ;;  %v744_v15 = vsel %vm644_vm2, %v2827_v13, 0.0 }
 0x170   :  { %745 = vadd.xlane.f32.xlu0 %v744_v15  ;;  %v741_v16 = vsel %vm644_vm2, %v2829_v14, 0.0  ;;  %v787_v19 = vrot.slane %v744_v15, 4 }
 0x171   :  { %742 = vadd.xlane.f32.xlu1 %v741_v16  ;;  %v781_v17 = vrot.slane %v741_v16, 4 }
 0x172   :  { %v788_v21 = vadd.f32 %v787_v19, %v744_v15 }
 0x173   :  { %v782_v18 = vadd.f32 %v781_v17, %v741_v16 }
 0x174   :  { %v789_v23 = vrot.slane %v788_v21, 2 }
 0x175   :  { %v783_v20 = vrot.slane %v782_v18, 2 }
 0x176   :  { %v790_v25 = vadd.f32 %v789_v23, %v788_v21 }
 0x177   :  { %v784_v22 = vadd.f32 %v783_v20, %v782_v18 }
 0x178   :  { %v791_v31 = vrot.slane %v790_v25, 1 }
 0x179   :  { %v785_v24 = vrot.slane %v784_v22, 1 }
 0x17a   :  { %v792_v32 = vadd.f32 %v791_v31, %v790_v25 }
 0x17b   :  { %v786_v26 = vadd.f32 %v785_v24, %v784_v22 }
 0x17d   :  { %2596 = vrcp.f32 %v786_v26 }
 0x17e   :  { %2598 = vrcp.f32 %v792_v32 }
 0x18a   :  { %v2597_v36 = vpop.eup %2596 }
 0x18b   :  { %v837_v37 = vmul.f32 %v2597_v36, %v2829_v14  ;;  %v2599_v42 = vpop.eup %2598 }
 0x18c   :  { %v838_v43 = vmul.f32 %v2599_v42, %v2827_v13 }
 0x19d   :  { %995 = vxpose.xlu0.b32.start.end [1/1] (short) (narrow) %v837_v37, 8 }
 0x1a4   :  { %1100 = vxpose.xlu1.b32.start.end [1/1] (short) (narrow) %v838_v43, 8 }
 0x1c3   :  { %v653_v44 = vpop.xlane.xlu0 %652 }
 0x1c4   :  { %v681_v45 = vrot.slane %v653_v44, 4 }
 0x1c6   :  { %v682_v50 = vmax.f32 %v653_v44, %v681_v45 }
 0x1c7   :  { %v656_v51 = vpop.xlane.xlu0 %655 }
 0x1c8   :  { %v683_v52 = vrot.slane %v682_v50, 2  ;;  %v687_v54 = vrot.slane %v656_v51, 4 }
 0x1ca   :  { %v684_v56 = vmax.f32 %v682_v50, %v683_v52  ;;  %v688_v57 = vmax.f32 %v656_v51, %v687_v54 }
 0x1cc   :  { %v685_v58 = vrot.slane %v684_v56, 1  ;;  %v689_v59 = vrot.slane %v688_v57, 2  ;;  %v659_v60 = vpop.xlane.xlu1 %658 }
 0x1cd   :  { %v662_v61 = vpop.xlane.xlu0 %661  ;;  %v693_v62 = vrot.slane %v659_v60, 4 }
 0x1ce   :  { %v686_v63 = vmax.f32 %v684_v56, %v685_v58  ;;  %v690_v1 = vmax.f32 %v688_v57, %v689_v59  ;;  %v699_v2 = vrot.slane %v662_v61, 4 }
 0x1cf   :  { %v694_v3 = vmax.f32 %v659_v60, %v693_v62 }
 0x1d0   :  { %v719_v4 = vsub.f32 %v2787_v30, %v686_v63  ;;  %v691_v5 = vrot.slane %v690_v1, 1  ;;  %v700_v6 = vmax.f32 %v662_v61, %v699_v2 }
 0x1d1   :  { %v695_v9 = vrot.slane %v694_v3, 2 }
 0x1d2   :  { %v729_v10 = vmul.f32 1.442695, %v719_v4  ;;  %v692_v11 = vmax.f32 %v690_v1, %v691_v5  ;;  %v701_v12 = vrot.slane %v700_v6, 2 }
 0x1d3   :  { %v696_v15 = vmax.f32 %v694_v3, %v695_v9 }
 0x1d4   :  { %2600 = vpow2.f32 %v729_v10  ;;  %v720_v16 = vsub.f32 %v2795_v35, %v692_v11  ;;  %v702_v17 = vmax.f32 %v700_v6, %v701_v12  ;;  %v665_v18 = vpop.xlane.xlu1 %664 }
 0x1d5   :  { %v697_v19 = vrot.slane %v696_v15, 1  ;;  %v668_v20 = vpop.xlane.xlu0 %667  ;;  %v705_v21 = vrot.slane %v665_v18, 4 }
 0x1d6   :  { %v731_v22 = vmul.f32 1.442695, %v720_v16  ;;  %v703_v23 = vrot.slane %v702_v17, 1  ;;  %v711_v24 = vrot.slane %v668_v20, 4 }
 0x1d7   :  { %v698_v25 = vmax.f32 %v696_v15, %v697_v19  ;;  %v706_v30 = vmax.f32 %v665_v18, %v705_v21 }
 0x1d8   :  { %2602 = vpow2.f32 %v731_v22  ;;  %v704_v26 = vmax.f32 %v702_v17, %v703_v23  ;;  %v712_v31 = vmax.f32 %v668_v20, %v711_v24 }
 0x1d9   :  { %v721_v32 = vsub.f32 %v2803_v40, %v698_v25  ;;  %v707_v36 = vrot.slane %v706_v30, 2 }
 0x1da   :  { %v722_v37 = vsub.f32 %v2805_v41, %v704_v26  ;;  %v713_v42 = vrot.slane %v712_v31, 2 }
 0x1db   :  { %v733_v35 = vmul.f32 1.442695, %v721_v32  ;;  %v708_v45 = vmax.f32 %v706_v30, %v707_v36 }
 0x1dc   :  { %v735_v43 = vmul.f32 1.442695, %v722_v37  ;;  %v714_v44 = vmax.f32 %v712_v31, %v713_v42 }
 0x1dd   :  { %2604 = vpow2.f32 %v733_v35  ;;  %v709_v54 = vrot.slane %v708_v45, 1 }
 0x1de   :  { %2606 = vpow2.f32 %v735_v43  ;;  %v715_v50 = vrot.slane %v714_v44, 1 }
 0x1df   :  { %v710_v58 = vmax.f32 %v708_v45, %v709_v54 }
 0x1e0   :  { %v716_v51 = vmax.f32 %v714_v44, %v715_v50 }
 0x1e1   :  { %v2841_v52 = vpop.eup %2600  ;;  %v723_v60 = vsub.f32 %v2815_v48, %v710_v58 }
 0x1e2   :  { %v724_v56 = vsub.f32 %v2817_v49, %v716_v51  ;;  %v747_v40 = vsel %vm644_vm2, %v2841_v52, 0.0 }
 0x1e3   :  { %748 = vadd.xlane.f32.xlu1 %v747_v40  ;;  %v737_v1 = vmul.f32 1.442695, %v723_v60  ;;  %v793_v3 = vrot.slane %v747_v40, 4 }
 0x1e4   :  { %v739_v57 = vmul.f32 1.442695, %v724_v56 }
 0x1e5   :  { %v2846_v41 = vpop.eup %2602  ;;  %v794_v6 = vadd.f32 %v793_v3, %v747_v40 }
 0x1e6   :  { %2608 = vpow2.f32 %v739_v57  ;;  %v750_v59 = vsel %vm644_vm2, %v2846_v41, 0.0 }
 0x1e7   :  { %751 = vadd.xlane.f32.xlu0 %v750_v59  ;;  %2610 = vpow2.f32 %v737_v1  ;;  %v799_v9 = vrot.slane %v750_v59, 4  ;;  %v795_v11 = vrot.slane %v794_v6, 2 }
 0x1e9   :  { %v800_v12 = vadd.f32 %v799_v9, %v750_v59  ;;  %v796_v17 = vadd.f32 %v795_v11, %v794_v6 }
 0x1ea   :  { %v2851_v61 = vpop.eup %2604 }
 0x1eb   :  { %v2853_v62 = vpop.eup %2606  ;;  %v753_v49 = vsel %vm644_vm2, %v2851_v61, 0.0  ;;  %v801_v18 = vrot.slane %v800_v12, 2  ;;  %v797_v22 = vrot.slane %v796_v17, 1 }
 0x1ec   :  { %v2859_v63 = vsel %vm644_vm2, %v2853_v62, 0.0  ;;  %754 = vadd.xlane.f32.xlu1 %v753_v49  ;;  %v805_v15 = vrot.slane %v753_v49, 4 }
 0x1ed   :  { %757 = vadd.xlane.f32.xlu0 %v2859_v63  ;;  %v802_v24 = vadd.f32 %v801_v18, %v800_v12  ;;  %v798_v32 = vadd.f32 %v797_v22, %v796_v17  ;;  %v811_v58 = vrot.slane %v2859_v63, 4 }
 0x1ee   :  { %v806_v19 = vadd.f32 %v805_v15, %v753_v49 }
 0x1ef   :  { %v803_v36 = vrot.slane %v802_v24, 1 }
 0x1f0   :  { %v807_v25 = vrot.slane %v806_v19, 2 }
 0x1f2   :  { %v808_v37 = vadd.f32 %v807_v25, %v806_v19 }
 0x1f3   :  { %v2862_v2 = vpop.eup %2608 }
 0x1f4   :  { %v2866_v48 = vsel %vm644_vm2, %v2862_v2, 0.0  ;;  %v2871_v10 = vpop.eup %2610 }
 0x1f5   :  { %763 = vadd.xlane.f32.xlu0 %v2866_v48  ;;  %v759_v16 = vsel %vm644_vm2, %v2871_v10, 0.0  ;;  %v823_v60 = vrot.slane %v2866_v48, 4 }
 0x1f6   :  { %v817_v20 = vrot.slane %v759_v16, 4 }
 0x1f7   :  { %v824_v1 = vadd.f32 %v823_v60, %v2866_v48 }
 0x1f8   :  { %v818_v26 = vadd.f32 %v817_v20, %v759_v16 }
 0x1f9   :  { %v746_v4 = vpop.xlane.xlu0 %745 }
 0x1fa   :  { %2612 = vrcp.f32 %v746_v4  ;;  %v743_v5 = vpop.xlane.xlu1 %742  ;;  %v819_v42 = vrot.slane %v818_v26, 2  ;;  %v825_v4 = vrot.slane %v824_v1, 2 }
 0x1fb   :  { %2614 = vrcp.f32 %v743_v5 }
 0x1fc   :  { %2616 = vrcp.f32 %v798_v32  ;;  %v826_v6 = vadd.f32 %v825_v4, %v824_v1 }
 0x1fd   :  { %2237 = vrot.lane.b32.xlu1 %v2734_v8, %s2644_s1 }
 0x1fe   :  { %v827_v11 = vrot.slane %v826_v6, 1 }
 0x200   :  { %v828_v12 = vadd.f32 %v827_v11, %v826_v6 }
 0x207   :  { %v2613_v21 = vpop.eup %2612 }
 0x208   :  { %v2615_v23 = vpop.eup %2614  ;;  %v774_v30 = vmul.f32 %v2613_v21, %v2827_v13  ;;  %v804_v13 = vadd.f32 %v803_v36, %v802_v24 }
 0x209   :  { %v773_v31 = vmul.f32 %v2615_v23, %v2829_v14  ;;  %v809_v14 = vrot.slane %v808_v37, 1  ;;  %v2617_v45 = vpop.eup %2616 }
 0x20a   :  { %2515 = vmatmul.mubr.msk.f32.vlgmr.msra.gmra.mxu1 %vm644_vm2, %v774_v30  ;;  %2618 = vrcp.f32 %v804_v13  ;;  %v839_v51 = vmul.f32 %v2617_v45, %v2841_v52 }
 0x20b   :  { %2510 = vmatmul.mubr.msk.f32.vlgmr.msra.gmra.mxu0 %vm644_vm2, %v773_v31  ;;  %2523 = vmatpush3.msra.mxu1 %v2734_v8  ;;  %v820_v8 = vadd.f32 %v819_v42, %v818_v26  ;;  %v810_v35 = vadd.f32 %v809_v14, %v808_v37 }
 0x20c   :  { %2518 = vmatpush3.msra.mxu0 %v2726_v7  ;;  %2519 = vmatprep.mubr.msk.f32.mxu0 %vm2642_vm1, %v2640_v0 }
 0x20d   :  { %2527 = vmatprep.subr.mxu0 %v2640_v0  ;;  %2524 = vmatprep.mubr.msk.f32.mxu1 %vm2642_vm1, %v2640_v0  ;;  %v821_v43 = vrot.slane %v820_v8, 1  ;;  %2620 = vrcp.f32 %v810_v35 }
 0x20e   :  { %2532 = vmatprep.subr.mxu1 %v2640_v0 }
 0x20f   :  { %v822_v7 = vadd.f32 %v821_v43, %v820_v8 }
 0x211   :  { %2622 = vrcp.f32 %v822_v7 }
 0x217   :  { %v2619_v54 = vpop.eup %2618 }
 0x219   :  { %v1011_v44 = vpop.trf.xlu0 }
 0x21a   :  { %2520 = vmatmul.mubr.msk.f32.vlgmr.msra.gmra.mxu0 %vm644_vm2, %v1011_v44  ;;  %v2621_v56 = vpop.eup %2620 }
 0x21b   :  { %2528 = vmatpush3.msra.mxu0 %v2781_v27  ;;  %2529 = vmatprep.mubr.msk.f32.mxu0 %vm2642_vm1, %v2640_v0  ;;  %v840_v27 = vmul.f32 %v2619_v54, %v2846_v41  ;;  %v841_v40 = vmul.f32 %v2621_v56, %v2851_v61 }
 0x21c   :  { %2537 = vmatprep.subr.mxu0 %v2640_v0 }
 0x21e   :  { %v2623_v57 = vpop.eup %2622 }
 0x21f   :  { %v843_v59 = vmul.f32 %v2623_v57, %v2871_v10 }
 0x220   :  { %v1116_v50 = vpop.trf.xlu1 }
 0x221   :  { %2525 = vmatmul.mubr.msk.f32.vlgmr.msra.gmra.mxu1 %vm644_vm2, %v1116_v50  ;;  %760 = vadd.xlane.f32.xlu1 %v759_v16 }
 0x222   :  { %2533 = vmatpush3.msra.mxu1 %v2785_v29  ;;  %1359 = vxpose.xlu0.b32.start.end [1/1] (short) (narrow) %v839_v51, 8  ;;  %v812_v29 = vadd.f32 %v811_v58, %v2859_v63 }
 0x223   :  { %2534 = vmatprep.mubr.msk.f32.mxu1 %vm2642_vm1, %v2640_v0  ;;  %2542 = vmatprep.subr.mxu1 %v2640_v0 }
 0x224   :  { %v813_v49 = vrot.slane %v812_v29, 2 }
 0x226   :  { %1468 = vxpose.xlu0.b32.start.end [1/1] (short) (narrow) %v840_v27, 8  ;;  %v814_v3 = vadd.f32 %v813_v49, %v812_v29 }
 0x228   :  { %v815_v5 = vrot.slane %v814_v3, 1 }
 0x22a   :  { %1729 = vxpose.xlu0.b32.start.end [1/1] (short) (narrow) %v841_v40, 8  ;;  %v816_v9 = vadd.f32 %v815_v5, %v814_v3 }
 0x22c   :  { %2624 = vrcp.f32 %v816_v9 }
 0x22d   :  { %2626 = vrcp.f32 %v828_v12 }
 0x22e   :  { %2097 = vxpose.xlu0.b32.start.end [1/1] (short) (narrow) %v843_v59, 8 }
 0x239   :  { %v2625_v15 = vpop.eup %2624 }
 0x23a   :  { %v842_v16 = vmul.f32 %v2625_v15, %v2853_v62  ;;  %v2627_v17 = vpop.eup %2626 }
 0x23b   :  { %v844_v63 = vmul.f32 %v2627_v17, %v2862_v2 }
 0x254   :  { %1837 = vxpose.xlu1.b32.start.end [1/1] (short) (narrow) %v842_v16, 8 }
 0x258   :  { %2205 = vxpose.xlu1.b32.start.end [1/1] (short) (narrow) %v844_v63, 8 }
 0x26c   :  { %v749_v18 = vpop.xlane.xlu1 %748 }
 0x26d   :  { %2628 = vrcp.f32 %v749_v18 }
 0x270   :  { %v752_v48 = vpop.xlane.xlu0 %751 }
 0x271   :  { %2630 = vrcp.f32 %v752_v48 }
 0x276   :  { %v758_v23 = vpop.xlane.xlu0 %757 }
 0x27a   :  { %v2629_v19 = vpop.eup %2628 }
 0x27b   :  { %v775_v20 = vmul.f32 %v2629_v19, %v2841_v52  ;;  %v755_v52 = vpop.xlane.xlu1 %754 }
 0x27c   :  { %2632 = vrcp.f32 %v755_v52 }
 0x27d   :  { %2530 = vmatmul.mubr.msk.f32.vlgmr.msra.gmra.mxu0 %vm644_vm2, %v775_v20  ;;  %2634 = vrcp.f32 %v758_v23 }
 0x27e   :  { %v2631_v21 = vpop.eup %2630  ;;  %2538 = vmatpush3.msra.mxu0 %v2783_v28  ;;  %2539 = vmatprep.mubr.msk.f32.mxu0 %vm2642_vm1, %v2640_v0  ;;  %v764_v28 = vpop.xlane.xlu0 %763 }
 0x27f   :  { %v776_v22 = vmul.f32 %v2631_v21, %v2846_v41  ;;  %2547 = vmatprep.subr.mxu0 %v2640_v0  ;;  %v2238_v26 = vpop.permute.xlu1 %2237 }
 0x281   :  { %2535 = vmatmul.mubr.msk.f32.vlgmr.msra.gmra.mxu1 %vm644_vm2, %v776_v22 }
 0x282   :  { %2543 = vmatpush3.msra.mxu1 %v2791_v33  ;;  %2544 = vmatprep.mubr.msk.f32.mxu1 %vm2642_vm1, %v2640_v0 }
 0x283   :  { %2552 = vmatprep.subr.mxu1 %v2640_v0 }
 0x289   :  { %v2633_v24 = vpop.eup %2632 }
 0x28a   :  { %v777_v33 = vmul.f32 %v2633_v24, %v2851_v61  ;;  %v2635_v41 = vpop.eup %2634 }
 0x29e   :  { %v1375_v25 = vpop.trf.xlu0 }
 0x29f   :  { %2540 = vmatmul.mubr.msk.f32.vlgmr.msra.gmra.mxu0 %vm644_vm2, %v1375_v25 }
 0x2a0   :  { %2548 = vmatpush3.msra.mxu0 %v2793_v34  ;;  %2549 = vmatprep.mubr.msk.f32.mxu0 %vm2642_vm1, %v2640_v0  ;;  %v778_v34 = vmul.f32 %v2635_v41, %v2853_v62 }
 0x2a1   :  { %2557 = vmatprep.subr.mxu0 %v2640_v0 }
 0x2a2   :  { %v1484_v30 = vpop.trf.xlu0 }
 0x2a3   :  { %2545 = vmatmul.mubr.msk.f32.vlgmr.msra.gmra.mxu1 %vm644_vm2, %v1484_v30  ;;  %2550 = vmatmul.mubr.msk.f32.vlgmr.msra.gmra.mxu0 %vm644_vm2, %v777_v33 }
 0x2a4   :  { %2553 = vmatpush3.msra.mxu1 %v2799_v38  ;;  %2558 = vmatpush3.msra.mxu0 %v2801_v39 }
 0x2a5   :  { %2554 = vmatprep.mubr.msk.f32.mxu1 %vm2642_vm1, %v2640_v0  ;;  %2559 = vmatprep.mubr.msk.f32.mxu0 %vm2642_vm1, %v2640_v0 }
 0x2a6   :  { %v1745_v61 = vpop.trf.xlu0  ;;  %2562 = vmatprep.subr.mxu1 %v2640_v0  ;;  %2567 = vmatprep.subr.mxu0 %v2640_v0 }
 0x2a7   :  { %2555 = vmatmul.mubr.msk.f32.vlgmr.msra.gmra.mxu1 %vm644_vm2, %v778_v34  ;;  %2560 = vmatmul.mubr.msk.f32.vlgmr.msra.gmra.mxu0 %vm644_vm2, %v1745_v61 }
 0x2a8   :  { %2563 = vmatpush3.msra.mxu1 %v2811_v46  ;;  %2568 = vmatpush3.msra.mxu0 %v2813_v47 }
 0x2a9   :  { %2569 = vmatprep.mubr.msk.f32.mxu0 %vm2642_vm1, %v2640_v0  ;;  %2577 = vmatprep.subr.mxu0 %v2640_v0 }
 0x2aa   :  { %v761_v38 = vpop.xlane.xlu1 %760  ;;  %2564 = vmatprep.mubr.msk.f32.mxu1 %vm2642_vm1, %v2640_v0  ;;  %2572 = vmatprep.subr.mxu1 %v2640_v0  ;;  %v2113_v46 = vpop.trf.xlu0 }
 0x2ab   :  { %2636 = vrcp.f32 %v761_v38 }
 0x2ac   :  { %2638 = vrcp.f32 %v764_v28 }
 0x2b8   :  { %v2637_v39 = vpop.eup %2636 }
 0x2b9   :  { %v779_v62 = vmul.f32 %v2637_v39, %v2871_v10  ;;  %v2639_v37 = vpop.eup %2638 }
 0x2bb   :  { %2570 = vmatmul.mubr.msk.f32.vlgmr.msra.gmra.mxu0 %vm644_vm2, %v779_v62 }
 0x2bc   :  { %2578 = vmatpush3.msra.mxu0 %v2825_v55  ;;  %2579 = vmatprep.mubr.msk.f32.mxu0 %vm2642_vm1, %v2640_v0  ;;  %v780_v55 = vmul.f32 %v2639_v37, %v2862_v2 }
 0x2bf   :  { %2580 = vmatmul.mubr.msk.f32.vlgmr.msra.gmra.mxu0 %vm644_vm2, %v2113_v46 }
 0x2ca   :  { %v2952_v47 = vpop.f32.mrf.mxu1 }
 0x2cb   :  { %v2954_v31 = vpop.f32.mrf.mxu0 }
 0x2cc   :  { %v2516_v32 = vpop.f32.mrf.mxu1 }
 0x2cd   :  { %v2511_v36 = vpop.f32.mrf.mxu0 }
 0x2d0   :  { %v1853_v42 = vpop.trf.xlu1 }
 0x2d1   :  { %2565 = vmatmul.mubr.msk.f32.vlgmr.msra.gmra.mxu1 %vm644_vm2, %v1853_v42 }
 0x2d2   :  { %2573 = vmatpush3.msra.mxu1 %v2823_v53  ;;  %2574 = vmatprep.mubr.msk.f32.mxu1 %vm2642_vm1, %v2640_v0 }
 0x2d3   :  { %2582 = vmatprep.subr.mxu1 %v2640_v0 }
 0x2d4   :  { %v2221_v10 = vpop.trf.xlu1 }
 0x2d5   :  { %2575 = vmatmul.mubr.msk.f32.vlgmr.msra.gmra.mxu1 %vm644_vm2, %v780_v55 }
 0x2d6   :  { %2583 = vmatpush3.msra.mxu1 %v2238_v26  ;;  %2584 = vmatprep.mubr.msk.f32.mxu1 %vm2642_vm1, %v2640_v0 }
 0x2d9   :  { %2585 = vmatmul.mubr.msk.f32.vlgmr.msra.gmra.mxu1 %vm644_vm2, %v2221_v10 }
 0x2da   :  { %v1096_v13 = vpop.f32.mrf.mxu0 }
 0x2dc   :  { %v2521_v14 = vpop.f32.mrf.mxu0 }
 0x2e1   :  { %v2966_v8 = vpop.f32.mrf.mxu1 }
 0x2e3   :  { %v2526_v53 = vpop.f32.mrf.mxu1 }
 0x33d   :  { %v1278_v35 = vpop.f32.mrf.mxu0 }
 0x33e   :  { %2315 = vrot.lane.b32.xlu0 %v1278_v35, %s2644_s1 }
 0x33f   :  { %v2531_v43 = vpop.f32.mrf.mxu0 }
 0x341   :  { %v1355_v7 = vpop.f32.mrf.mxu1 }
 0x342   :  { %2317 = vrot.lane.b32.xlu1 %v1355_v7, %s2644_s1 }
 0x343   :  { %v2536_v2 = vpop.f32.mrf.mxu1 }
 0x35f   :  { %v1464_v44 = vpop.f32.mrf.mxu0 }
 0x360   :  { %2349 = vrot.lane.b32.xlu0 %v1464_v44, %s2644_s1 }
 0x361   :  { %v2541_v0 = vpop.f32.mrf.mxu0 }
 0x363   :  { %v1573_v45 = vpop.f32.mrf.mxu1  ;;  %v1649_v50 = vpop.f32.mrf.mxu0 }
 0x364   :  { %2351 = vrot.lane.b32.xlu1 %v1573_v45, %s2644_s1 }
 0x365   :  { %v2546_v51 = vpop.f32.mrf.mxu1  ;;  %v2551_v54 = vpop.f32.mrf.mxu0 }
 0x367   :  { %v1725_v27 = vpop.f32.mrf.mxu1  ;;  %v1833_v56 = vpop.f32.mrf.mxu0 }
 0x368   :  { %2323 = vrot.lane.b32.xlu1 %v1649_v50, %s2643_s0  ;;  %2357 = vrot.lane.b32.xlu0 %v1833_v56, %s2643_s0 }
 0x369   :  { %v2556_v40 = vpop.f32.mrf.mxu1  ;;  %v2561_v57 = vpop.f32.mrf.mxu0 }
 0x36c   :  { %2325 = vrot.lane.b32.xlu1 %v1725_v27, %s2643_s0 }
 0x37b   :  { %v2017_v58 = vpop.f32.mrf.mxu0 }
 0x37c   :  { %2331 = vrot.lane.b32.xlu0 %v2017_v58, %s2641_s24 }
 0x37d   :  { %v2571_v59 = vpop.f32.mrf.mxu0 }
 0x37f   :  { %v2201_v29 = vpop.f32.mrf.mxu0 }
 0x380   :  { %2365 = vrot.lane.b32.xlu0 %v2201_v29, %s2641_s24 }
 0x381   :  { %v2581_v60 = vpop.f32.mrf.mxu0 }
 0x391   :  { %v1941_v49 = vpop.f32.mrf.mxu1 }
 0x392   :  { %2359 = vrot.lane.b32.xlu1 %v1941_v49, %s2643_s0 }
 0x393   :  { %v2566_v1 = vpop.f32.mrf.mxu1 }
 0x395   :  { %v2093_v3 = vpop.f32.mrf.mxu1 }
 0x396   :  { %2333 = vrot.lane.b32.xlu1 %v2093_v3, %s2641_s24 }
 0x397   :  { %v2576_v4 = vpop.f32.mrf.mxu1 }
 0x399   :  { %v2309_v5 = vpop.f32.mrf.mxu1 }
 0x39a   :  { %2367 = vrot.lane.b32.xlu1 %v2309_v5, %s2641_s24 }
 0x39b   :  { %v2586_v6 = vpop.f32.mrf.mxu1 }
 0x3b0   :  { %v2316_v11 = vpop.permute.xlu0 %2315 }
 0x3b1   :  { %v2337_v63 = vsel %vm23_vm0, %v2954_v31, %v2316_v11 }
 0x3b4   :  { %v2318_v9 = vpop.permute.xlu1 %2317 }
 0x3b5   :  { %v2338_v24 = vsel %vm23_vm0, %v2952_v47, %v2318_v9 }
 0x3d2   :  { %v2350_v15 = vpop.permute.xlu0 %2349 }
 0x3d3   :  { %v2371_v20 = vsel %vm23_vm0, %v1096_v13, %v2350_v15 }
 0x3d6   :  { %v2352_v12 = vpop.permute.xlu1 %2351 }
 0x3d7   :  { %v2372_v30 = vsel %vm23_vm0, %v2966_v8, %v2352_v12 }
 0x3da   :  { %v2358_v16 = vpop.permute.xlu0 %2357  ;;  %v2324_v17 = vpop.permute.xlu1 %2323 }
 0x3db   :  { %v2340_v18 = vsel %vm2339_vm3, %v2337_v63, %v2324_v17  ;;  %v2373_v21 = vsel %vm2339_vm3, %v2371_v20, %v2358_v16 }
 0x3de   :  { %v2326_v23 = vpop.permute.xlu1 %2325 }
 0x3df   :  { %v2341_v25 = vsel %vm2339_vm3, %v2338_v24, %v2326_v23 }
 0x3ee   :  { %v2332_v48 = vpop.permute.xlu0 %2331 }
 0x3ef   :  { %v2343_v19 = vsel %vm2342_vm4, %v2340_v18, %v2332_v48 }
 0x3f0   :  { %2345 = vst [vmem:[%s3011_s4] sm:$0xff] %v2343_v19 }
 0x3f2   :  { %v2366_v22 = vpop.permute.xlu0 %2365 }
 0x3f3   :  { %v2375_v52 = vsel %vm2342_vm4, %v2373_v21, %v2366_v22 }
 0x3f4   :  { %2377 = vst [vmem:[%s3012_s5] sm:$0xff] %v2375_v52 }
 0x404   :  { %v2360_v28 = vpop.permute.xlu1 %2359 }
 0x405   :  { %v2374_v34 = vsel %vm2339_vm3, %v2372_v30, %v2360_v28 }
 0x408   :  { %v2334_v33 = vpop.permute.xlu1 %2333 }
 0x409   :  { %v2344_v41 = vsel %vm2342_vm4, %v2341_v25, %v2334_v33 }
 0x40a   :  { %2346 = vst [vmem:[%s3011_s4 + $0x8] sm:$0xff] %v2344_v41 }
 0x40c   :  { %v2368_v26 = vpop.permute.xlu1 %2367 }
 0x40d   :  { %v2376_v61 = vsel %vm2342_vm4, %v2374_v34, %v2368_v26 }
 0x40e   :  { %2378 = vst [vmem:[%s3012_s5 + $0x8] sm:$0xff] %v2376_v61 }

</bundles_post_ra>
